<compile_context>
chip_gen: v7x
topology: tpu7x:2x2x1
jax: 0.10.0
libtpu: 0.0.40
codegen_flags: <defaults>
</compile_context>

<pallas_src>
import functools

import jax
import jax.numpy as jnp
from jax.experimental import pallas as pl
from jax.experimental.pallas import tpu as pltpu

EPS = 1e-12  # matches torch.nn.functional.normalize default


def _mh_rmsnorm_kernel(x_ref, g_ref, o_ref, *, scale, d, groups):
    # x_ref/o_ref: (TB, TN, L) with L = groups * d; g_ref: (1, L).
    x = x_ref[...]                      # native dtype (f32 or bf16/f16)
    gam = g_ref[...]                    # (1, L), hoisted once per block

    def row_scale(xs_f32):
        # max(sqrt(ss), EPS) == sqrt(max(ss, EPS*EPS)); rsqrt runs on the EUP
        # and the sqrt(D) scale is folded into the tiny per-row vector.
        ss = jnp.sum(xs_f32 * xs_f32, axis=-1, keepdims=True)   # (TB, TN, 1) f32
        return jax.lax.rsqrt(jnp.maximum(ss, EPS * EPS)) * scale

    if groups == 1:
        xf = x.astype(jnp.float32)
        inv = row_scale(xf)
        if x.dtype == jnp.float32:
            y = xf * inv
        else:
            # Keep the product in the input dtype (bf16 VPU on v6e/v7x).
            y = x * inv.astype(x.dtype)
    else:
        # Lane-packed path: each 128-lane row holds `groups` original rows of
        # width d; normalize each d-lane segment independently (exact f32 sum).
        parts = []
        for j in range(groups):         # static unroll, groups in {2, 4}
            xj = x[..., j * d:(j + 1) * d]
            xjf = xj.astype(jnp.float32)
            inv = row_scale(xjf)
            if x.dtype == jnp.float32:
                parts.append(xjf * inv)
            else:
                parts.append(xj * inv.astype(x.dtype))
        y = jnp.concatenate(parts, axis=-1)   # (TB, TN, L), lane-dense again

    o_ref[...] = (y * gam.astype(y.dtype)).astype(o_ref.dtype)


def _pick_tiles(b, n_rows, lanes, target_bytes):
    """Pick (tile_b, tile_rows) so one block's f32 footprint ~ target_bytes."""
    # Budget in f32 rows: the kernel upcasts to f32 for the reduction, so the
    # real per-block footprint is lanes*4 per row regardless of input dtype.
    rows_budget = max(8, target_bytes // (lanes * 4))
    if b * n_rows <= rows_budget:
        return b, n_rows                                  # whole (B, Np) slab
    if b * 8 <= rows_budget:
        tile_n = max(8, ((rows_budget // b) // 8) * 8)    # multiple of 8
        return b, min(tile_n, n_rows)
    # Batch alone exceeds the budget even at 8 rows: shrink the batch tile.
    tile_n = n_rows if n_rows < 8 else 8
    tile_b = max(1, min(b, rows_budget // max(1, tile_n)))
    return tile_b, tile_n


def multi_head_rms_norm(x, gamma, *, tile_rows=None, target_block_bytes=2 << 20):
    """x: (B, heads, seq, dim); gamma: (heads, 1, dim).

    tile_rows (optional, testing): seq-tile size in *packed* rows; must be a
    multiple of 8 or >= the packed seq length.
    """
    B, H, N, D = x.shape
    assert gamma.shape == (H, 1, D), gamma.shape
    scale = float(D) ** 0.5

    # Lane packing for D < 128: fold g consecutive seq rows into one 128-lane
    # row so HBM<->VMEM traffic is lane-dense on both load and store.
    groups = 1
    if D < 128 and 128 % D == 0 and N % (128 // D) == 0:
        groups = 128 // D
    L = D * groups
    Np = N // groups

    xp = x.reshape(B, H, Np, L)                                    # free view
    gp = gamma if groups == 1 else jnp.tile(gamma, (1, 1, groups))  # (H, 1, L)

    itemsize = jnp.dtype(x.dtype).itemsize
    tile_b, tile_np = _pick_tiles(B, Np, L, target_block_bytes)
    if tile_rows is not None:
        tile_np = min(tile_rows, Np)
    n_b = pl.cdiv(B, tile_b)
    n_n = pl.cdiv(Np, tile_np)

    # Explicit scoped-VMEM limit: double-buffered in+out blocks plus headroom
    # for the in-kernel f32 intermediates. Capped well under v7x physical VMEM.
    in_blk = tile_b * tile_np * L * itemsize
    f32_blk = tile_b * tile_np * L * 4
    vmem_est = 2 * (2 * in_blk) + 4 * f32_blk + (2 << 20)
    vmem_limit = int(min(max(vmem_est, 32 << 20), 40 << 20))

    kernel = functools.partial(_mh_rmsnorm_kernel, scale=scale, d=D, groups=groups)

    out = pl.pallas_call(
        kernel,
        out_shape=jax.ShapeDtypeStruct((B, H, Np, L), x.dtype),
        grid_spec=pltpu.PrefetchScalarGridSpec(
            num_scalar_prefetch=0,
            grid=(n_b, H, n_n),   # seq innermost: contiguous HBM stream per (b,h),
                                  # gamma block index unchanged while n varies.
            in_specs=[
                # x: head dim squeezed -> kernel sees (tile_b, tile_np, L)
                pl.BlockSpec((tile_b, None, tile_np, L),
                             lambda bb, h, n: (bb, h, n, 0)),
                # gamma: per-head row, head dim squeezed -> kernel sees (1, L)
                pl.BlockSpec((None, 1, L), lambda bb, h, n: (h, 0, 0)),
            ],
            out_specs=pl.BlockSpec((tile_b, None, tile_np, L),
                                   lambda bb, h, n: (bb, h, n, 0)),
        ),
        compiler_params=pltpu.CompilerParams(
            dimension_semantics=("parallel", "parallel", "parallel"),
            vmem_limit_bytes=vmem_limit,
        ),
        cost_estimate=pl.CostEstimate(
            flops=4 * B * H * N * D,
            transcendentals=B * H * N,
            bytes_accessed=2 * B * H * N * D * itemsize
            + H * D * jnp.dtype(gamma.dtype).itemsize,
        ),
    )(xp, gp)

    return out.reshape(B, H, N, D)


def _reference(x, gamma):
    D = x.shape[-1]
    xf = x.astype(jnp.float32)
    norm = jnp.sqrt(jnp.sum(xf * xf, axis=-1, keepdims=True))
    y = xf / jnp.maximum(norm, EPS)
    return y * gamma.astype(jnp.float32)[None] * (D ** 0.5)


if __name__ == "__main__":
    key = jax.random.PRNGKey(0)
    k = jax.random.split(key, 8)

    # 1) Small module-consistent shape, packed path g=4 (D=32), single tile.
    B, H, N, D = 2, 4, 8, 32
    x1 = jax.random.normal(k[0], (B, H, N, D), dtype=jnp.float32)
    g1 = jnp.ones((H, 1, D), jnp.float32) + 0.1 * jax.random.normal(k[1], (H, 1, D))
    o1 = jax.block_until_ready(multi_head_rms_norm(x1, g1))
    r1 = _reference(x1, g1)
    assert o1.shape == (B, H, N, D)
    assert jnp.allclose(o1, r1, atol=1e-5, rtol=1e-5), float(jnp.max(jnp.abs(o1 - r1)))

    # 2) Lane-dense D=128 path with a multi-tile seq grid (3 tiles).
    B2, H2, N2, D2 = 2, 2, 48, 128
    x2 = jax.random.normal(k[2], (B2, H2, N2, D2), dtype=jnp.float32)
    g2 = jnp.ones((H2, 1, D2), jnp.float32) + 0.1 * jax.random.normal(k[3], (H2, 1, D2))
    o2 = jax.block_until_ready(multi_head_rms_norm(x2, g2, tile_rows=16))
    r2 = _reference(x2, g2)
    assert jnp.allclose(o2, r2, atol=1e-5, rtol=1e-5), float(jnp.max(jnp.abs(o2 - r2)))

    # 3) Packed path g=2 (D=64), bf16 input, NON-divisible packed seq (partial
    #    last tile exercises the masked-write / garbage-read-in-dead-rows case).
    B3, H3, N3, D3 = 2, 2, 40, 64
    x3 = jax.random.normal(k[4], (B3, H3, N3, D3), dtype=jnp.float32).astype(jnp.bfloat16)
    g3 = jnp.ones((H3, 1, D3), jnp.float32) + 0.1 * jax.random.normal(k[5], (H3, 1, D3))
    o3 = jax.block_until_ready(multi_head_rms_norm(x3, g3, tile_rows=8))
    r3 = _reference(x3, g3)
    assert o3.dtype == jnp.bfloat16
    assert jnp.allclose(o3.astype(jnp.float32), r3, atol=5e-2, rtol=5e-2), (
        float(jnp.max(jnp.abs(o3.astype(jnp.float32) - r3))))

    # 4) D<128 but not packable (N % g != 0) -> generic fallback path.
    B4, H4, N4, D4 = 1, 2, 7, 64
    x4 = jax.random.normal(k[6], (B4, H4, N4, D4), dtype=jnp.float32)
    g4 = jnp.ones((H4, 1, D4), jnp.float32) + 0.1 * jax.random.normal(k[7], (H4, 1, D4))
    o4 = jax.block_until_ready(multi_head_rms_norm(x4, g4))
    r4 = _reference(x4, g4)
    assert jnp.allclose(o4, r4, atol=1e-5, rtol=1e-5), float(jnp.max(jnp.abs(o4 - r4)))

    print("KERNEL_OK")
</pallas_src>

<mosaic_0001>
module attributes {stable_mosaic.version = 11 : i64} {
  func.func @_mh_rmsnorm_kernel(%arg0: i32, %arg1: i32, %arg2: i32, %arg3: memref<2x1x2x128xf32, #tpu.memory_space<vmem>>, %arg4: memref<1x1x128xf32, #tpu.memory_space<vmem>>, %arg5: memref<2x1x2x128xf32, #tpu.memory_space<vmem>>) attributes {dimension_semantics = [#tpu.dimension_semantics<parallel>, #tpu.dimension_semantics<parallel>, #tpu.dimension_semantics<parallel>], iteration_bounds = array<i64: 1, 4, 1>, scalar_prefetch = 0 : i64, scratch_operands = 0 : i64, tpu.core_type = #tpu.core_type<tc>, window_params = [{transform_indices = @transform_0, window_bounds = array<i64: 2, 1, 2, 128>}, {transform_indices = @transform_1, window_bounds = array<i64: 1, 1, 128>}, {transform_indices = @transform_2, window_bounds = array<i64: 2, 1, 2, 128>}]} {
    %c0 = arith.constant 0 : index
    %c0_0 = arith.constant 0 : index
    %c0_1 = arith.constant 0 : index
    %c0_2 = arith.constant 0 : index
    %0 = vector.load %arg3[%c0, %c0_0, %c0_1, %c0_2] : memref<2x1x2x128xf32, #tpu.memory_space<vmem>>, vector<2x1x2x128xf32>
    %1 = vector.shape_cast %0 : vector<2x1x2x128xf32> to vector<2x2x128xf32>
    %c0_3 = arith.constant 0 : index
    %c0_4 = arith.constant 0 : index
    %c0_5 = arith.constant 0 : index
    %2 = vector.load %arg4[%c0_3, %c0_4, %c0_5] : memref<1x1x128xf32, #tpu.memory_space<vmem>>, vector<1x1x128xf32>
    %3 = vector.shape_cast %2 : vector<1x1x128xf32> to vector<1x128xf32>
    %4 = vector.extract_strided_slice %1 {offsets = [0, 0, 0], sizes = [2, 2, 32], strides = [1, 1, 1]} : vector<2x2x128xf32> to vector<2x2x32xf32>
    %5 = arith.mulf %4, %4 : vector<2x2x32xf32>
    %cst = arith.constant dense<0.000000e+00> : vector<2x2xf32>
    %6 = vector.multi_reduction <add>, %5, %cst [2] : vector<2x2x32xf32> to vector<2x2xf32>
    %7 = vector.shape_cast %6 : vector<2x2xf32> to vector<2x2x1xf32>
    %cst_6 = arith.constant 1.000000e-24 : f32
    %8 = vector.broadcast %cst_6 : f32 to vector<2x2x1xf32>
    %9 = arith.maximumf %7, %8 : vector<2x2x1xf32>
    %10 = math.rsqrt %9 : vector<2x2x1xf32>
    %cst_7 = arith.constant 5.65685415 : f32
    %11 = vector.broadcast %cst_7 : f32 to vector<2x2x1xf32>
    %12 = arith.mulf %10, %11 : vector<2x2x1xf32>
    %13 = vector.broadcast %12 : vector<2x2x1xf32> to vector<2x2x32xf32>
    %14 = arith.mulf %4, %13 : vector<2x2x32xf32>
    %15 = vector.extract_strided_slice %1 {offsets = [0, 0, 32], sizes = [2, 2, 32], strides = [1, 1, 1]} : vector<2x2x128xf32> to vector<2x2x32xf32>
    %16 = arith.mulf %15, %15 : vector<2x2x32xf32>
    %cst_8 = arith.constant dense<0.000000e+00> : vector<2x2xf32>
    %17 = vector.multi_reduction <add>, %16, %cst_8 [2] : vector<2x2x32xf32> to vector<2x2xf32>
    %18 = vector.shape_cast %17 : vector<2x2xf32> to vector<2x2x1xf32>
    %cst_9 = arith.constant 1.000000e-24 : f32
    %19 = vector.broadcast %cst_9 : f32 to vector<2x2x1xf32>
    %20 = arith.maximumf %18, %19 : vector<2x2x1xf32>
    %21 = math.rsqrt %20 : vector<2x2x1xf32>
    %cst_10 = arith.constant 5.65685415 : f32
    %22 = vector.broadcast %cst_10 : f32 to vector<2x2x1xf32>
    %23 = arith.mulf %21, %22 : vector<2x2x1xf32>
    %24 = vector.broadcast %23 : vector<2x2x1xf32> to vector<2x2x32xf32>
    %25 = arith.mulf %15, %24 : vector<2x2x32xf32>
    %26 = vector.extract_strided_slice %1 {offsets = [0, 0, 64], sizes = [2, 2, 32], strides = [1, 1, 1]} : vector<2x2x128xf32> to vector<2x2x32xf32>
    %27 = arith.mulf %26, %26 : vector<2x2x32xf32>
    %cst_11 = arith.constant dense<0.000000e+00> : vector<2x2xf32>
    %28 = vector.multi_reduction <add>, %27, %cst_11 [2] : vector<2x2x32xf32> to vector<2x2xf32>
    %29 = vector.shape_cast %28 : vector<2x2xf32> to vector<2x2x1xf32>
    %cst_12 = arith.constant 1.000000e-24 : f32
    %30 = vector.broadcast %cst_12 : f32 to vector<2x2x1xf32>
    %31 = arith.maximumf %29, %30 : vector<2x2x1xf32>
    %32 = math.rsqrt %31 : vector<2x2x1xf32>
    %cst_13 = arith.constant 5.65685415 : f32
    %33 = vector.broadcast %cst_13 : f32 to vector<2x2x1xf32>
    %34 = arith.mulf %32, %33 : vector<2x2x1xf32>
    %35 = vector.broadcast %34 : vector<2x2x1xf32> to vector<2x2x32xf32>
    %36 = arith.mulf %26, %35 : vector<2x2x32xf32>
    %37 = vector.extract_strided_slice %1 {offsets = [0, 0, 96], sizes = [2, 2, 32], strides = [1, 1, 1]} : vector<2x2x128xf32> to vector<2x2x32xf32>
    %38 = arith.mulf %37, %37 : vector<2x2x32xf32>
    %cst_14 = arith.constant dense<0.000000e+00> : vector<2x2xf32>
    %39 = vector.multi_reduction <add>, %38, %cst_14 [2] : vector<2x2x32xf32> to vector<2x2xf32>
    %40 = vector.shape_cast %39 : vector<2x2xf32> to vector<2x2x1xf32>
    %cst_15 = arith.constant 1.000000e-24 : f32
    %41 = vector.broadcast %cst_15 : f32 to vector<2x2x1xf32>
    %42 = arith.maximumf %40, %41 : vector<2x2x1xf32>
    %43 = math.rsqrt %42 : vector<2x2x1xf32>
    %cst_16 = arith.constant 5.65685415 : f32
    %44 = vector.broadcast %cst_16 : f32 to vector<2x2x1xf32>
    %45 = arith.mulf %43, %44 : vector<2x2x1xf32>
    %46 = vector.broadcast %45 : vector<2x2x1xf32> to vector<2x2x32xf32>
    %47 = arith.mulf %37, %46 : vector<2x2x32xf32>
    %48 = tpu.concatenate %14, %25, %36, %47 in 2 : vector<2x2x32xf32>, vector<2x2x32xf32>, vector<2x2x32xf32>, vector<2x2x32xf32> -> vector<2x2x128xf32>
    %49 = vector.shape_cast %3 : vector<1x128xf32> to vector<1x1x128xf32>
    %50 = vector.broadcast %49 : vector<1x1x128xf32> to vector<2x2x128xf32>
    %51 = arith.mulf %48, %50 : vector<2x2x128xf32>
    %c0_17 = arith.constant 0 : index
    %c0_18 = arith.constant 0 : index
    %c0_19 = arith.constant 0 : index
    %c0_20 = arith.constant 0 : index
    %52 = vector.load %arg5[%c0_17, %c0_18, %c0_19, %c0_20] : memref<2x1x2x128xf32, #tpu.memory_space<vmem>>, vector<2x1x2x128xf32>
    %53 = vector.shape_cast %52 : vector<2x1x2x128xf32> to vector<2x2x128xf32>
    %54 = vector.shape_cast %51 : vector<2x2x128xf32> to vector<2x1x2x128xf32>
    tpu.vector_store %arg5[%c0_17, %c0_18, %c0_19, %c0_20], %54 {strides = array<i32>} : memref<2x1x2x128xf32, #tpu.memory_space<vmem>>, vector<2x1x2x128xf32>,
    return
  }
  func.func @transform_0(%arg0: i32, %arg1: i32, %arg2: i32) -> (i32, i32, i32, i32) {
    %c0_i32 = arith.constant 0 : i32
    %c0_i32_0 = arith.constant 0 : i32
    return %arg0, %arg1, %arg2, %c0_i32 : i32, i32, i32, i32
  }
  func.func @transform_1(%arg0: i32, %arg1: i32, %arg2: i32) -> (i32, i32, i32) {
    %c0_i32 = arith.constant 0 : i32
    %c0_i32_0 = arith.constant 0 : i32
    %c0_i32_1 = arith.constant 0 : i32
    return %arg1, %c0_i32, %c0_i32_0 : i32, i32, i32
  }
  func.func @transform_2(%arg0: i32, %arg1: i32, %arg2: i32) -> (i32, i32, i32, i32) {
    %c0_i32 = arith.constant 0 : i32
    %c0_i32_0 = arith.constant 0 : i32
    return %arg0, %arg1, %arg2, %c0_i32 : i32, i32, i32, i32
  }
}

</mosaic_0001>

<bundles_post_ra>
// kernel: tpu_custom_call.1
= control target key start
LH: loop header
LB: loop body
LE: loop exit
PB: predicated region body
PF: predicated region fallthrough
CT: control target
= control target key end

     0   :  { %7 = vsyncpa [#allocation3], 0  ;;  %s988_s0 = inlined_call_operand.hbm [shape: f32[2,4,2,128], index: 0, kind: input, shape index: {}]   ;;  %s989_s1 = inlined_call_operand.hbm [shape: f32[4,1,128], index: 1, kind: input, shape index: {}]   ;;  %s990_s2 = inlined_call_operand.hbm [shape: f32[2,4,2,128], index: 2, kind: output, shape index: {}]  }
   0x1   :  { %9 = vsyncpa [#allocation3 + $0x1], 0 }
   0x2   :  { %10 = vsyncpa [#allocation6], 0 }
   0x3   :  { %12 = vsyncpa [#allocation6 + $0x1], 0 }
   0x4   :  { %13 = vsyncpa [#allocation4], 0 }
   0x5   :  { %15 = vsyncpa [#allocation4 + $0x1], 0  ;;  %s736_s9 = smov 0   ;;  %s738_s10 = smov 0  }
   0x6   :  { %s740_s11 = smov 0   ;;  %s742_s12 = smov 0  }
   0x7   :  { %s744_s13 = smov 0   ;;  %s746_s14 = smov 0  }
   0x8 LB: > { %s456_s15 = sadd.s32 4294967295, %s708_s14   ;;  %s457_s16 = sadd.s32 4294967294, %s708_s14   ;;  %s708_s14 = sphi %s746_s14, %s21_s14   ;;  %s704_s13 = sphi %s744_s13, %s1007_s13   ;;  %s700_s12 = sphi %s742_s12, %s1006_s12   ;;  %s696_s11 = sphi %s740_s11, %s1005_s11   ;;  %s692_s10 = sphi %s738_s10, %s1004_s10   ;;  %s688_s9 = sphi %s736_s9, %s1003_s9  }
   0x9   : > { %s36_s17 = sadd.s32 1, %s704_s13  ;;  %s51_s18 = sadd.s32 1, %s696_s11 }
   0xa   : > { %p38_p0 = scmp.ge.s32.totalorder %s36_s17, 4  ;;  %p58_p1 = scmp.ne.s32.totalorder %s696_s11, %s692_s10 }
   0xb   : > { %p59_p2 = scmp.eq.s32.totalorder %s708_s14, 0  ;;  %p64_p3 = scmp.ne.s32.totalorder %s692_s10, %s688_s9 }
   0xc   : > { %s1009_s17 = smov (%p38_p0, %s36_s17), 0  ;;  %p65_p5 = scmp.eq.s32.totalorder %s456_s15, 0 }
   0xd   : > { %p777_p4 = por %p59_p2, %p58_p1  ;;  %s45_s20 = ssub.s32 %s704_s13, %s1009_s17 }
   0xe   : > { %p118_p6 = scmp.eq.s32.totalorder %s456_s15, 3  ;;  %p49_p7 = scmp.eq.s32.totalorder %s45_s20, 0 }
   0xf   : > { %p783_p8 = por %p65_p5, %p64_p3  ;;  %p124_p10 = scmp.eq.s32.totalorder %s457_s16, 3 }
  0x10   : > { %p787_p9 = por %p118_p6, %p58_p1  ;;  %p488_p12 = scmp.lt.s32.totalorder %s708_s14, 4 }
  0x11   : > { %s994_s21 = scalar_select %p783_p8, 1, 0 }
  0x12   : > { %s995_s22 = scalar_select %p787_p9, 1, 0 }
  0x13   : > { %s792_s23 = scalar_select %p49_p7, %s696_s11, %s51_s18  }
  0x14   : > { %p794_p11 = por %p124_p10, %p64_p3  ;;  %s800_s25 = sand.u32 1, %s696_s11  }
  0x15   : > { %s460_s26 = sshll.u32 %s800_s25, 2  ;;  %s461_s27 = sshll.u32 %s704_s13, 5 }
  0x16   : > { %s996_s24 = scalar_select %p794_p11, 1, 0 }
  0x17   : > { %s807_s30 = scalar_lea.hbm %s988_s0, %s461_s27  ;;  %s148_s3 = scalar_lea.vmem [#allocation2], %s460_s26 }
  0x18   : > { %s158_s4 = sshll.u32 %s148_s3, 4  ;;  %p813_p13 = pnand %p488_p12, %p777_p4  ;;  %s809_s4 = int_to_ptr.vmem [resolvable:$true] %s158_s4 }
  0x19   : > { %s145_s6 = scalar_lea.sflag [#allocation3], %s800_s25  ;;  %s562_s7 = scalar_lea.hbm %s807_s30, 64 }
  0x1a   : > { %p563_p0 = scmp.ne.s32.totalorder %s807_s30, %s562_s7  ;;  %p564_p1 = pneg %p813_p13 }
  0x1b   : > { %s567_s16 = scalar_lea.hbm %s988_s0, 256  ;;  %p568_p4 = scmp.lt.u32.totalorder %s807_s30, %s988_s0 }
  0x1c   : > { %p565_p2 = pnand %p564_p1, %p563_p0  ;;  %p569_p5 = scmp.lt.u32.totalorder %s567_s16, %s562_s7 }
  0x1d   : > { %p571_p7 = scmp.lt.u32.totalorder %s562_s7, %s807_s30 }
  0x1e   : > { %p566_p3 = pneg %p565_p2  ;;  %p570_p6 = por %p569_p5, %p568_p4 }
  0x20   : > { %p572_p10 = por %p571_p7, %p570_p6 }
  0x22   : > { %p573_p12 = pnand %p572_p10, %p566_p3 }
  0x24   : > { %576 = shalt.err (!%p573_p12)
}
  0x25   : > { %s577_s20 = scalar_lea.vmem %s809_s4, 64  ;;  %s710_s26 = smov [#allocation2]  }
  0x26   : > { %p578_p0 = scmp.ne.s32.totalorder %s809_s4, %s577_s20  ;;  %s582_s27 = sshll.u32 %s710_s26, 4  ;;  %s583_s27 = int_to_ptr.vmem [resolvable:$false] %s582_s27 }
  0x27   : > { %s584_s28 = scalar_lea.vmem %s583_s27, 128  ;;  %p585_p9 = scmp.lt.s32.totalorder %s809_s4, %s583_s27 }
  0x28   : > { %p580_p2 = pnand %p578_p0, %p564_p1  ;;  %p586_p4 = scmp.lt.s32.totalorder %s584_s28, %s577_s20 }
  0x2a   : > { %p581_p11 = pneg %p580_p2  ;;  %p587_p5 = por %p586_p4, %p585_p9 }
  0x2c   : > { %p588_p6 = pnand %p587_p5, %p581_p11 }
  0x2e   : > { %591 = shalt.err (!%p588_p6)
}
  0x2f   : > { %s711_s29 = smov 128   ;;  %s712_s3 = smov 32  }
  0x30   : > { %s713_s7 = smov 2   ;;  %p463_p3 = scmp.ge.s32.totalorder %s708_s14, 1 }
  0x31   : > { %480 = dma.hbm_to_vmem [thread:$0]  (!%p813_p13), %s807_s30, 64, %s809_s4, %s145_s6, %s711_s29, %s712_s3, %s713_s7  }
  0x32   : > { %p183_p9 = scmp.lt.s32.totalorder %s708_s14, 5  ;;  %s462_s15 = sshll.u32 %s704_s13, 4 }
  0x33   : > { %s855_s19 = scalar_lea.hbm %s989_s1, %s462_s15  ;;  %s171_s20 = scalar_lea.vmem [#allocation5], %s800_s25 }
  0x34   : > { %p847_p11 = pnand %p463_p3, %p183_p9  ;;  %s178_s26 = sshll.u32 %s171_s20, 4  ;;  %s179_s26 = int_to_ptr.vmem [resolvable:$true] %s178_s26 }
  0x35   : > { %s169_s30 = scalar_lea.sflag [#allocation6], %s800_s25  ;;  %s592_s4 = scalar_lea.hbm %s855_s19, 16 }
  0x36   : > { %s998_s8 = scalar_select %p847_p11, 1, 0 }
  0x37   : > { %p593_p7 = scmp.ne.s32.totalorder %s855_s19, %s592_s4  ;;  %s597_s28 = scalar_lea.hbm %s989_s1, 64 }
  0x38   : > { %p598_p0 = scmp.lt.u32.totalorder %s855_s19, %s989_s1  ;;  %p599_p2 = scmp.lt.u32.totalorder %s597_s28, %s592_s4 }
  0x39   : > { %p595_p10 = pnand %p593_p7, %p564_p1  ;;  %p601_p5 = scmp.lt.u32.totalorder %s592_s4, %s855_s19 }
  0x3a   : > { %p600_p4 = por %p599_p2, %p598_p0 }
  0x3b   : > { %p596_p12 = pneg %p595_p10 }
  0x3c   : > { %p602_p6 = por %p601_p5, %p600_p4 }
  0x3e   : > { %p603_p3 = pnand %p602_p6, %p596_p12 }
  0x40   : > { %606 = shalt.err (!%p603_p3)
}
  0x41   : > { %s607_s25 = scalar_lea.vmem %s179_s26, 16  ;;  %s714_s7 = smov [#allocation5]  }
  0x42   : > { %p608_p9 = scmp.ne.s32.totalorder %s179_s26, %s607_s25  ;;  %s612_s15 = sshll.u32 %s714_s7, 4  ;;  %s613_s15 = int_to_ptr.vmem [resolvable:$false] %s612_s15 }
  0x43   : > { %s614_s16 = scalar_lea.vmem %s613_s15, 32  ;;  %p615_p8 = scmp.lt.s32.totalorder %s179_s26, %s613_s15 }
  0x44   : > { %p610_p7 = pnand %p608_p9, %p564_p1  ;;  %p616_p11 = scmp.lt.s32.totalorder %s614_s16, %s607_s25 }
  0x46   : > { %p611_p10 = pneg %p610_p7  ;;  %p617_p0 = por %p616_p11, %p615_p8 }
  0x48   : > { %p618_p2 = pnand %p617_p0, %p611_p10 }
  0x4a   : > { %621 = shalt.err (!%p618_p2)
}
  0x4b   : > { %483 = dma.hbm_to_vmem [thread:$0]  (!%p813_p13), %s855_s19, 16, %s179_s26, %s169_s30  }
  0x4c   : > { %p999_p12 = scmp.ne.s32.totalorder %s998_s8, 0 }
  0x4d   : > { %s881_s18 = sand.u32 (!%p999_p12), 1, %s692_s10   ;;  %p1000_p8 = scmp.ne.s32.totalorder (!%p999_p12), %s994_s21, 0 }
  0x4e   : > { %187 = sbr.rel (%p999_p12) target bundleno = 396 (0x18c), region = 28  ;;  %s464_s20 = sshll.u32 (!%p999_p12), %s881_s18, 2 }
  0x4f   : > { %s190_s4 = scalar_lea.sflag (!%p999_p12), [#allocation3], %s881_s18  ;;  %s193_s6 = scalar_lea.vmem (!%p999_p12), [#allocation2], %s464_s20 }
  0x55   : > { %675 = dma.done.wait (%p1000_p8), %s190_s4, 64  }
  0x56   : > { %677 = vsyncadd (%p1000_p8), %s190_s4, 4294967232  ;;  %s199_s5 = scalar_lea.sflag [#allocation6], %s881_s18  ;;  %s201_s8 = scalar_lea.vmem [#allocation5], %s881_s18 }
  0x57   : > { %679 = dma.done.wait (%p1000_p8), %s199_s5, 16  }
  0x58   : > { %681 = vsyncadd (%p1000_p8), %s199_s5, 4294967280  ;;  %v897_v0 = vld [vmem:[%s193_s6] sm:$0x3]  ;;  %v899_v1 = vld [vmem:[%s193_s6 + $0x2] sm:$0x3]  ;;  %s715_s19 = smov 96  }
  0x59   : > { %v231_v2 = vmul.f32 %v897_v0, %v897_v0  ;;  %s716_s26 = smov 64   ;;  %v232_v3 = vmul.f32 %v899_v1, %v899_v1  ;;  %s717_s30 = smov 32   ;;  %vm233_vm0 = vcmask 254976   ;;  %vm310_vm1 = vcmask 261120   ;;  %v466_v54 = vld [vmem:[%s201_s8] ss:$0 sm:$0xff] }
  0x5a   : > { %vm313_vm2 = vcmask 523264   ;;  %vm316_vm3 = vcmask 785408   ;;  %s225_s21 = scalar_lea.vmem [#allocation7], %s464_s20  ;;  %s468_s28 = sshll.u32 %s700_s12, 5 }
  0x5b   : > { %250 = vrot.lane.b32.xlu0 %v231_v2, %s715_s19  ;;  %270 = vrot.lane.b32.xlu1 %v231_v2, %s716_s26  ;;  %v234_v4 = vsel %vm233_vm0, %v231_v2, 0.0  ;;  %v237_v5 = vsel %vm233_vm0, %v232_v3, 0.0  ;;  %s346_s27 = sshll.u32 %s225_s21, 4  ;;  %s937_s25 = scalar_lea.hbm %s990_s2, %s468_s28  ;;  %s939_s27 = int_to_ptr.vmem [resolvable:$true] %s346_s27 }
  0x5c   : > { %s330_s12 = scalar_lea.sflag [#allocation4], %s881_s18  ;;  %s622_s7 = scalar_lea.vmem %s939_s27, 64 }
  0x5d   : > { %p623_p13 = scmp.ne.s32.totalorder %s939_s27, %s622_s7  ;;  %p1001_p1 = scmp.ne.s32.totalorder %s995_s22, 0 }
  0x5e   : > { %s718_s15 = smov [#allocation7]  }
  0x5f   : > { %252 = vrot.lane.b32.xlu0 %v232_v3, %s715_s19  ;;  %272 = vrot.lane.b32.xlu1 %v232_v3, %s716_s26  ;;  %p624_p11 = pnand %p623_p13, %p1001_p1  ;;  %s626_s16 = sshll.u32 %s718_s15, 4  ;;  %s627_s16 = int_to_ptr.vmem [resolvable:$false] %s626_s16 }
  0x60   : > { %s628_s20 = scalar_lea.vmem %s627_s16, 128  ;;  %p629_p5 = scmp.lt.s32.totalorder %s939_s27, %s627_s16 }
  0x61   : > { %p625_p4 = pneg %p624_p11  ;;  %p630_p6 = scmp.lt.s32.totalorder %s628_s20, %s622_s7 }
  0x63   : > { %290 = vrot.lane.b32.xlu0 %v231_v2, %s717_s30  ;;  %292 = vrot.lane.b32.xlu1 %v232_v3, %s717_s30  ;;  %p631_p3 = por %p630_p6, %p629_p5 }
  0x65   : > { %p632_p9 = pnand %p631_p3, %p625_p4 }
  0x82   : > { %235 = vadd.xlane.f32.xlu0 %v234_v4 }
  0x87   : > { %238 = vadd.xlane.f32.xlu1 %v237_v5 }
  0xcd   : > { %v251_v6 = vpop.permute.xlu0 %250  ;;  %v271_v7 = vpop.permute.xlu1 %270 }
  0xce   : > { %v256_v8 = vsel %vm233_vm0, %v251_v6, 0.0  ;;  %v276_v9 = vsel %vm233_vm0, %v271_v7, 0.0 }
  0xcf   : > { %257 = vadd.xlane.f32.xlu0 %v256_v8  ;;  %277 = vadd.xlane.f32.xlu1 %v276_v9 }
  0xd1   : > { %v253_v10 = vpop.permute.xlu0 %252  ;;  %v273_v11 = vpop.permute.xlu1 %272 }
  0xd2   : > { %v259_v12 = vsel %vm233_vm0, %v253_v10, 0.0  ;;  %v279_v13 = vsel %vm233_vm0, %v273_v11, 0.0 }
  0xd3   : > { %260 = vadd.xlane.f32.xlu0 %v259_v12 }
  0xd5   : > { %v291_v14 = vpop.permute.xlu0 %290  ;;  %v293_v15 = vpop.permute.xlu1 %292 }
  0xd6   : > { %v296_v16 = vsel %vm233_vm0, %v291_v14, 0.0  ;;  %v299_v17 = vsel %vm233_vm0, %v293_v15, 0.0 }
  0xd7   : > { %297 = vadd.xlane.f32.xlu1 %v296_v16  ;;  %280 = vadd.xlane.f32.xlu0 %v279_v13 }
  0xdb   : > { %300 = vadd.xlane.f32.xlu0 %v299_v17 }
 0x10f   : > { %v236_v18 = vpop.xlane.xlu0 %235 }
 0x110   : > { %v240_v20 = vmax.f32 %v236_v18, 1e-24 }
 0x112   : > { %546 = vrsqrt.f32 %v240_v20 }
 0x114   : > { %v239_v19 = vpop.xlane.xlu1 %238 }
 0x115   : > { %v241_v25 = vmax.f32 %v239_v19, 1e-24 }
 0x11c   : > { %v547_v32 = vpop.eup %546 }
 0x11d   : > { %v244_v39 = vmul.f32 5.656854, %v547_v32 }
 0x11f   : > { %v246_v43 = vmul.f32 %v244_v39, %v897_v0 }
 0x15c   : > { %v258_v21 = vpop.xlane.xlu0 %257  ;;  %v278_v22 = vpop.xlane.xlu1 %277 }
 0x15d   : > { %v262_v23 = vmax.f32 %v258_v21, 1e-24  ;;  %v282_v24 = vmax.f32 %v278_v22, 1e-24 }
 0x15f   : > { %548 = vrsqrt.f32 %v262_v23 }
 0x160   : > { %550 = vrsqrt.f32 %v282_v24  ;;  %v261_v26 = vpop.xlane.xlu0 %260 }
 0x161   : > { %v263_v27 = vmax.f32 %v261_v26, 1e-24  ;;  %552 = vrsqrt.f32 %v241_v25 }
 0x163   : > { %554 = vrsqrt.f32 %v263_v27 }
 0x164   : > { %v298_v28 = vpop.xlane.xlu1 %297  ;;  %v281_v29 = vpop.xlane.xlu0 %280 }
 0x165   : > { %v302_v30 = vmax.f32 %v298_v28, 1e-24  ;;  %v283_v31 = vmax.f32 %v281_v29, 1e-24 }
 0x167   : > { %556 = vrsqrt.f32 %v302_v30 }
 0x168   : > { %558 = vrsqrt.f32 %v283_v31  ;;  %v301_v33 = vpop.xlane.xlu0 %300 }
 0x169   : > { %v549_v34 = vpop.eup %548  ;;  %v303_v35 = vmax.f32 %v301_v33, 1e-24 }
 0x16a   : > { %v551_v36 = vpop.eup %550  ;;  %v266_v37 = vmul.f32 5.656854, %v549_v34 }
 0x16b   : > { %560 = vrsqrt.f32 %v303_v35  ;;  %v553_v38 = vpop.eup %552  ;;  %v286_v41 = vmul.f32 5.656854, %v551_v36 }
 0x16c   : > { %v268_v42 = vmul.f32 %v266_v37, %v897_v0  ;;  %v245_v44 = vmul.f32 5.656854, %v553_v38 }
 0x16d   : > { %v555_v40 = vpop.eup %554  ;;  %v288_v47 = vmul.f32 %v286_v41, %v897_v0 }
 0x16e   : > { %v267_v45 = vmul.f32 5.656854, %v555_v40  ;;  %v311_v49 = vsel %vm310_vm1, %v246_v43, %v268_v42  ;;  %v247_v52 = vmul.f32 %v245_v44, %v899_v1 }
 0x16f   : > { %v314_v57 = vsel %vm313_vm2, %v311_v49, %v288_v47 }
 0x170   : > { %v269_v53 = vmul.f32 %v267_v45, %v899_v1 }
 0x171   : > { %v557_v46 = vpop.eup %556 }
 0x172   : > { %v559_v48 = vpop.eup %558  ;;  %v306_v50 = vmul.f32 5.656854, %v557_v46  ;;  %v312_v62 = vsel %vm310_vm1, %v247_v52, %v269_v53 }
 0x173   : > { %v287_v51 = vmul.f32 5.656854, %v559_v48 }
 0x174   : > { %v308_v55 = vmul.f32 %v306_v50, %v897_v0 }
 0x175   : > { %v561_v56 = vpop.eup %560  ;;  %v289_v58 = vmul.f32 %v287_v51, %v899_v1 }
 0x176   : > { %v317_v59 = vsel %vm316_vm3, %v314_v57, %v308_v55  ;;  %v307_v60 = vmul.f32 5.656854, %v561_v56 }
 0x177   : > { %v325_v61 = vmul.f32 %v466_v54, %v317_v59  ;;  %v315_v0 = vsel %vm313_vm2, %v312_v62, %v289_v58 }
 0x178   : > { %v309_v63 = vmul.f32 %v307_v60, %v899_v1 }
 0x179   : > { %327 = vst [vmem:[%s225_s21] sm:$0x3] %v325_v61 }
 0x17a   : > { %v318_v2 = vsel %vm316_vm3, %v315_v0, %v309_v63 }
 0x17b   : > { %v326_v3 = vmul.f32 %v466_v54, %v318_v2 }
 0x17d   : > { %328 = vst [vmem:[%s225_s21 + $0x2] sm:$0x3] %v326_v3 }
 0x17e   : > { %635 = shalt.err (!%p632_p9)
}
 0x17f   : > { %s636_s4 = scalar_lea.hbm %s937_s25, 64  ;;  %s640_s8 = scalar_lea.hbm %s990_s2, 256 }
 0x180   : > { %p637_p7 = scmp.ne.s32.totalorder %s937_s25, %s636_s4  ;;  %p641_p2 = scmp.lt.u32.totalorder %s937_s25, %s990_s2 }
 0x181   : > { %p642_p12 = scmp.lt.u32.totalorder %s640_s8, %s636_s4  ;;  %p644_p13 = scmp.lt.u32.totalorder %s636_s4, %s937_s25 }
 0x182   : > { %p638_p10 = pnand %p637_p7, %p1001_p1 }
 0x183   : > { %p643_p8 = por %p642_p12, %p641_p2 }
 0x184   : > { %p639_p0 = pneg %p638_p10 }
 0x185   : > { %p645_p11 = por %p644_p13, %p643_p8 }
 0x187   : > { %p646_p4 = pnand %p645_p11, %p639_p0 }
 0x189   : > { %649 = shalt.err (!%p646_p4)
}
 0x18a   : > { %s719_s21 = smov 128   ;;  %s720_s28 = smov 2  }
 0x18b   : > { %475 = dma.vmem_to_hbm [thread:$0]  (%p1001_p1), %s939_s27, 64, %s937_s25, %s330_s12, %s717_s30, %s719_s21, %s720_s28  }
 0x18c PF: > { %p489_p5 = scmp.ge.s32.totalorder %s708_s14, 2  ;;  %s361_s29 = sand.u32 1, %s688_s9  }
 0x18d   : > { %p1002_p6 = scmp.ne.s32.totalorder %s996_s24, 0  ;;  %s362_s3 = scalar_lea.sflag [#allocation4], %s361_s29 }
 0x18f   : > { %p485_p3 = pnand %p489_p5, %p1002_p6 }
 0x191   : > { %683 = dma.done.wait (!%p485_p3), %s362_s3, 64  }
 0x192   : > { %685 = vsyncadd (!%p485_p3), %s362_s3, 4294967232  ;;  %s21_s14 = sadd.s32 1, %s708_s14   ;;  %s1003_s9 = smov %s692_s10 }
 0x193   : > { %p18_p9 = scmp.ge.s32.totalorder %s21_s14, 6   ;;  %s1004_s10 = smov %s696_s11 }
 0x194   : > { %s1005_s11 = smov %s792_s23  ;;  %s1006_s12 = smov %s704_s13 }
 0x195   : > { %s1007_s13 = smov %s1009_s17  ;;  %20 = sbr.rel (!%p18_p9) target bundleno = 8 (0x8), region = 86 }
 0x19c   :  { %367 = vsyncpa [#allocation3], 1 }
 0x19d   :  { %369 = vsyncpa [#allocation3 + $0x1], 1 }
 0x19e   :  { %370 = vsyncpa [#allocation6], 1 }
 0x19f   :  { %372 = vsyncpa [#allocation6 + $0x1], 1 }
 0x1a0   :  { %373 = vsyncpa [#allocation4], 1 }
 0x1a1   :  { %375 = vsyncpa [#allocation4 + $0x1], 1 }

</bundles_post_ra>
